<compile_context>
chip_gen: v6e
topology: v6e:2x2x1
jax: 0.10.0
libtpu: 0.0.40
codegen_flags: <defaults>
</compile_context>

<pallas_src>
import functools

import jax
import jax.numpy as jnp
import numpy as np
from jax.experimental import pallas as pl
from jax.experimental.pallas import tpu as pltpu


# --------------------------------------------------------------------------- #
# Host-side (init-time) parameter packing
# --------------------------------------------------------------------------- #

def bilinear_matrices(h_in, w_in):
    """Interpolation matrices for nn.Upsample(scale=2, bilinear, align_corners=True)."""
    def interp(n_in, n_out):
        m = np.zeros((n_out, n_in), np.float32)
        if n_in == 1:
            m[:, 0] = 1.0
            return m
        src = np.arange(n_out, dtype=np.float64) * (n_in - 1) / (n_out - 1)
        lo = np.clip(np.floor(src).astype(np.int64), 0, n_in - 2)
        frac = (src - lo).astype(np.float32)
        rows = np.arange(n_out)
        m[rows, lo] += 1.0 - frac
        m[rows, lo + 1] += frac
        return m
    return interp(h_in, 2 * h_in), interp(w_in, 2 * w_in)


def prepare_params(raw, *, Cx, Cs, Hs, Ws):
    """Pack PyTorch-layout params into the fused kernel's layouts (done once)."""
    Cin = Cx + Cs
    cmid1, cout1 = raw["w1"].shape[0], raw["w2"].shape[0]
    cmid2, cout2 = raw["w3"].shape[0], raw["w4"].shape[0]
    E = raw["we"].shape[0]
    cmax = max(Cin, cmid1, cout1, cmid2, cout2)
    cmax = ((cmax + 7) // 8) * 8          # sublane-aligned channel padding

    def pack_w(w):                        # (Co, Ci, 3, 3) -> (cmax, 9*cmax)
        co, ci = w.shape[0], w.shape[1]
        wp = jnp.zeros((cmax, cmax, 3, 3), jnp.float32).at[:co, :ci].set(w)
        # columns ordered as (dy*3 + dx)*cmax + cin  == the in-kernel patch order
        return jnp.transpose(wp, (0, 2, 3, 1)).reshape(cmax, 9 * cmax)

    def pack_col(v):                      # (C,) -> (cmax, 1), zero padded
        return jnp.zeros((cmax, 1), jnp.float32).at[:v.shape[0], 0].set(v)

    w_all = jnp.stack([pack_w(raw["w1"]), pack_w(raw["w2"]),
                       pack_w(raw["w3"]), pack_w(raw["w4"])]).astype(jnp.bfloat16)
    gn_g = jnp.stack([pack_col(raw["g1"]), pack_col(raw["g2"]),
                      pack_col(raw["g3"]), pack_col(raw["g4"])])
    gn_b = jnp.stack([pack_col(raw["b1"]), pack_col(raw["b2"]),
                      pack_col(raw["b3"]), pack_col(raw["b4"])])
    weT = jnp.zeros((cmax, E), jnp.float32).at[:cout2, :].set(raw["we"].T)
    be = pack_col(raw["be"])

    Ah, Aw = bilinear_matrices(Hs, Ws)
    # x_up(c, p*Wo+q) = sum_{h,w} x(c, h*Ws+w) * Ah[p,h]*Aw[q,w]  ->  x @ kron(Ah,Aw).T
    ut = jnp.asarray(np.kron(Ah, Aw).T, dtype=jnp.float32)       # (Hs*Ws, Ho*Wo)

    packed = dict(w_all=w_all, gn_g=gn_g, gn_b=gn_b, weT=weT, be=be, ut=ut)
    dims = dict(cmax=cmax, cmid1=cmid1, cout1=cout1, cmid2=cmid2, cout2=cout2)
    return packed, dims, (Ah, Aw)


# --------------------------------------------------------------------------- #
# In-kernel math helpers (no dependence on erf / logistic lowering rules)
# --------------------------------------------------------------------------- #

def _erf(v):
    """Abramowitz & Stegun 7.1.26 erf approximation, |err| <= 1.5e-7."""
    a1, a2, a3, a4, a5 = 0.254829592, -0.284496736, 1.421413741, -1.453152027, 1.061405429
    p = 0.3275911
    sgn = jnp.where(v >= 0.0, 1.0, -1.0)
    av = jnp.abs(v)
    t = 1.0 / (1.0 + p * av)
    poly = ((((a5 * t + a4) * t + a3) * t + a2) * t + a1) * t
    return sgn * (1.0 - poly * jnp.exp(-av * av))


def _gelu(v):  # torch nn.GELU default (exact / erf form)
    return 0.5 * v * (1.0 + _erf(v * 0.7071067811865476))


def _silu(v):
    return v * (1.0 / (1.0 + jnp.exp(-v)))


# --------------------------------------------------------------------------- #
# Fused kernel
# --------------------------------------------------------------------------- #

def _up_fused_kernel(x_ref, skip_ref, t_ref, ut_ref, w_ref, gng_ref, gnb_ref,
                     wet_ref, be_ref, o_ref, *,
                     Cs, Cx, cmax, cmid1, cout1, cmid2, cout2, Wo, Npix, taps):
    f32 = jnp.float32

    # ---- conv border masks (zero padding of the 3x3 conv), computed once ----
    lane = jax.lax.broadcasted_iota(jnp.int32, (cmax, Npix), 1)
    if (Wo & (Wo - 1)) == 0:
        col = jnp.bitwise_and(lane, Wo - 1)           # lane % Wo (power-of-two W)
    else:
        col = lane % Wo   # TODO(synk): vector int remainder path is untested here

    def tap_mask(dy, dx):
        m = None
        if dy == 0:
            m = lane >= Wo                            # drop first output row
        elif dy == 2:
            m = lane < (Npix - Wo)                    # drop last output row
        if dx == 0:
            c = col >= 1
            m = c if m is None else jnp.logical_and(m, c)
        elif dx == 2:
            c = col <= (Wo - 2)
            m = c if m is None else jnp.logical_and(m, c)
        return m

    masks = {(dy, dx): tap_mask(dy, dx) for dy in range(3) for dx in range(3)}

    def conv_gn(act, stage, cout_real):
        """3x3 same conv as ONE bf16 im2col matmul + GroupNorm(1, cout_real)."""
        tap_vals = []
        for shift, dy, dx in taps:                    # 9 taps, row-major (dy, dx)
            v = act if shift == 0 else pltpu.roll(act, shift, axis=1)
            m = masks[(dy, dx)]
            if m is not None:
                v = jnp.where(m, v, 0.0)
            tap_vals.append(v)
        patches = jnp.concatenate(tap_vals, axis=0)   # (9*cmax, Npix) f32, aligned
        y = jnp.dot(w_ref[stage], patches.astype(jnp.bfloat16),
                    preferred_element_type=f32)       # (cmax, Npix) f32
        # Padded output channels are exactly zero (zero weight rows), so global
        # sums over the padded block equal sums over the real channels.
        inv_n = 1.0 / (cout_real * Npix)
        mu = jnp.sum(y) * inv_n
        ex2 = jnp.sum(y * y) * inv_n
        var = jnp.maximum(ex2 - mu * mu, 0.0)
        inv = jax.lax.rsqrt(var + 1e-5)
        # padded channels have gamma = beta = 0 -> stay exactly 0
        return (y - mu) * inv * gng_ref[stage] + gnb_ref[stage]

    # ---- bilinear 2x upsample of x (one matmul) + channel concat with skip ----
    x_up = jnp.dot(x_ref[0].astype(f32), ut_ref[...],
                   preferred_element_type=f32)        # (Cx, Npix)
    parts = [skip_ref[0].astype(f32), x_up]           # torch.cat([skip, up(x)], dim=C)
    if Cs + Cx < cmax:
        parts.append(jnp.zeros((cmax - Cs - Cx, Npix), f32))
    x0 = jnp.concatenate(parts, axis=0)               # (cmax, Npix)

    # ---- DoubleConv #1 (residual=True, mid = out = num_in_channels) ----
    h = _gelu(conv_gn(x0, 0, cmid1))
    h = _gelu(x0 + conv_gn(h, 1, cout1))
    # ---- DoubleConv #2 (mid = num_in // 2, no residual, no trailing gelu) ----
    h = _gelu(conv_gn(h, 2, cmid2))
    h = conv_gn(h, 3, cout2)

    # ---- emb_layer: Linear(SiLU(t)), broadcast over all pixels ----
    z = _silu(t_ref[0].astype(f32))                   # (1, E) row
    emb = jnp.sum(wet_ref[...] * z, axis=1, keepdims=True) + be_ref[...]   # (cmax, 1)

    o_ref[0] = (h + emb).astype(o_ref.dtype)          # lane-dense (cmax, Npix) store


# --------------------------------------------------------------------------- #
# Wrapper
# --------------------------------------------------------------------------- #

def up_forward(packed, dims, x_nchw, skip_nchw, t, *, roll_like_jnp=True):
    B, Cx, Hs, Ws = x_nchw.shape
    _, Cs, Ho, Wo = skip_nchw.shape
    E = t.shape[1]
    Npix, Nsmall = Ho * Wo, Hs * Ws
    cmax, cout2 = dims["cmax"], dims["cout2"]

    # NCHW -> (B, C, H*W): pure view reshapes, no transposes anywhere.
    x3 = x_nchw.reshape(B, Cx, Nsmall).astype(jnp.float32)
    skip3 = skip_nchw.reshape(B, Cs, Npix).astype(jnp.float32)
    trow = t.reshape(B, 1, E).astype(jnp.float32)

    # Static lane-roll amounts for the 9 conv taps (sign pinned by the probe).
    taps = []
    for dy in range(3):
        for dx in range(3):
            off = (dy - 1) * Wo + (dx - 1)
            shift = ((-off) if roll_like_jnp else off) % Npix
            taps.append((shift, dy, dx))

    kernel = functools.partial(
        _up_fused_kernel, Cs=Cs, Cx=Cx, cmax=cmax, cmid1=dims["cmid1"],
        cout1=dims["cout1"], cmid2=dims["cmid2"], cout2=cout2,
        Wo=Wo, Npix=Npix, taps=tuple(taps))

    out3 = pl.pallas_call(
        kernel,
        out_shape=jax.ShapeDtypeStruct((B, cmax, Npix), jnp.float32),
        grid=(B,),
        in_specs=[
            pl.BlockSpec((1, Cx, Nsmall), lambda b: (b, 0, 0)),      # x
            pl.BlockSpec((1, Cs, Npix), lambda b: (b, 0, 0)),        # skip
            pl.BlockSpec((1, 1, E), lambda b: (b, 0, 0)),            # t (row)
            pl.BlockSpec((Nsmall, Npix), lambda b: (0, 0)),          # upsample matrix
            pl.BlockSpec((4, cmax, 9 * cmax), lambda b: (0, 0, 0)),  # conv weights
            pl.BlockSpec((4, cmax, 1), lambda b: (0, 0, 0)),         # GN gamma
            pl.BlockSpec((4, cmax, 1), lambda b: (0, 0, 0)),         # GN beta
            pl.BlockSpec((cmax, E), lambda b: (0, 0)),               # emb weight^T
            pl.BlockSpec((cmax, 1), lambda b: (0, 0)),               # emb bias
        ],
        out_specs=pl.BlockSpec((1, cmax, Npix), lambda b: (b, 0, 0)),
        compiler_params=pltpu.CompilerParams(dimension_semantics=("parallel",)),
    )(x3, skip3, trow, packed["ut"], packed["w_all"], packed["gn_g"],
      packed["gn_b"], packed["weT"], packed["be"])

    # (B, Cmax, H*W) -> NCHW, drop padded channels.  View reshape only.
    return out3.reshape(B, cmax, Ho, Wo)[:, :cout2]


def _roll_matches_jnp():
    """One-time probe pinning pltpu.roll's rotation direction vs jnp.roll."""
    x = jnp.arange(8 * 128, dtype=jnp.float32).reshape(8, 128)

    def k(x_ref, o_ref):
        o_ref[...] = pltpu.roll(x_ref[...], 3, axis=1)

    y = pl.pallas_call(k, out_shape=jax.ShapeDtypeStruct((8, 128), jnp.float32))(x)
    if bool(jnp.array_equal(y, jnp.roll(x, 3, axis=1))):
        return True
    if bool(jnp.array_equal(y, jnp.roll(x, -3, axis=1))):
        return False
    raise RuntimeError("unexpected pltpu.roll semantics")


# --------------------------------------------------------------------------- #
# Pure-JAX reference (for the correctness check)
# --------------------------------------------------------------------------- #

def up_forward_reference(raw, x, skip, t, Ah, Aw):
    f32 = jnp.float32
    x, skip, t = x.astype(f32), skip.astype(f32), t.astype(f32)
    xu = jnp.einsum("ph,bchw->bcpw", Ah, x)
    xu = jnp.einsum("qw,bcpw->bcpq", Aw, xu)
    x0 = jnp.concatenate([skip, xu], axis=1)

    def conv(v, w):  # bias=False, padding=1; bf16 operands / f32 accum like the kernel
        return jax.lax.conv_general_dilated(
            v.astype(jnp.bfloat16), w.astype(jnp.bfloat16),
            window_strides=(1, 1), padding="SAME",
            dimension_numbers=("NCHW", "OIHW", "NCHW"),
            preferred_element_type=f32)

    def gn(v, g, b):
        mu = jnp.mean(v, axis=(1, 2, 3), keepdims=True)
        var = jnp.mean(jnp.square(v - mu), axis=(1, 2, 3), keepdims=True)
        vhat = (v - mu) * jax.lax.rsqrt(var + 1e-5)
        return vhat * g[None, :, None, None] + b[None, :, None, None]

    gelu = lambda v: jax.nn.gelu(v, approximate=False)
    h = gelu(gn(conv(x0, raw["w1"]), raw["g1"], raw["b1"]))
    h = gelu(x0 + gn(conv(h, raw["w2"]), raw["g2"], raw["b2"]))
    h = gelu(gn(conv(h, raw["w3"]), raw["g3"], raw["b3"]))
    h = gn(conv(h, raw["w4"]), raw["g4"], raw["b4"])
    emb = jax.nn.silu(t) @ raw["we"] + raw["be"]
    return h + emb[:, :, None, None]


# --------------------------------------------------------------------------- #
# main
# --------------------------------------------------------------------------- #

if __name__ == "__main__":
    key = jax.random.PRNGKey(0)
    ks = jax.random.split(key, 20)

    B = 2
    num_in_channels = 8            # channels after concat([skip, up(x)])
    num_out_channels = 8
    mid2 = num_in_channels // 2
    emb_dim = 32
    Hs = Ws = 8                    # x spatial; skip / output spatial = 16 x 16
    Cx = num_in_channels // 2
    Cs = num_in_channels - Cx

    def normal(k, shape, scale=0.1):
        return jax.random.normal(k, shape, jnp.float32) * scale

    # Parameters in PyTorch layout: conv weights OIHW (bias=False), linear (in, out).
    raw = {
        "w1": normal(ks[0], (num_in_channels, num_in_channels, 3, 3)),
        "g1": 1.0 + normal(ks[1], (num_in_channels,)), "b1": normal(ks[2], (num_in_channels,)),
        "w2": normal(ks[3], (num_in_channels, num_in_channels, 3, 3)),
        "g2": 1.0 + normal(ks[4], (num_in_channels,)), "b2": normal(ks[5], (num_in_channels,)),
        "w3": normal(ks[6], (mid2, num_in_channels, 3, 3)),
        "g3": 1.0 + normal(ks[7], (mid2,)), "b3": normal(ks[8], (mid2,)),
        "w4": normal(ks[9], (num_out_channels, mid2, 3, 3)),
        "g4": 1.0 + normal(ks[10], (num_out_channels,)), "b4": normal(ks[11], (num_out_channels,)),
        "we": normal(ks[12], (emb_dim, num_out_channels)),
        "be": normal(ks[13], (num_out_channels,)),
    }

    x = jax.random.normal(ks[14], (B, Cx, Hs, Ws), jnp.float32)
    skip_x = jax.random.normal(ks[15], (B, Cs, 2 * Hs, 2 * Ws), jnp.float32)
    t = jax.random.normal(ks[16], (B, emb_dim), jnp.float32)

    roll_like_jnp = _roll_matches_jnp()
    packed, dims, (Ah, Aw) = prepare_params(raw, Cx=Cx, Cs=Cs, Hs=Hs, Ws=Ws)

    fwd = jax.jit(lambda pk, xx, ss, tt: up_forward(
        pk, dims, xx, ss, tt, roll_like_jnp=roll_like_jnp))
    out = jax.block_until_ready(fwd(packed, x, skip_x, t))

    assert out.shape == (B, num_out_channels, 2 * Hs, 2 * Ws), out.shape
    assert bool(jnp.all(jnp.isfinite(out)))

    ref = up_forward_reference(raw, x, skip_x, t, Ah, Aw)
    max_err = float(jnp.max(jnp.abs(out - ref)))
    assert bool(jnp.allclose(out, ref, atol=5e-2, rtol=5e-2)), f"max abs err {max_err}"

    print("KERNEL_OK")
</pallas_src>

<mosaic_0001>
module attributes {stable_mosaic.version = 11 : i64} {
  func.func @k(%arg0: memref<8x128xf32, #tpu.memory_space<vmem>>, %arg1: memref<8x128xf32, #tpu.memory_space<vmem>>) attributes {dimension_semantics = [], scalar_prefetch = 0 : i64, scratch_operands = 0 : i64, tpu.core_type = #tpu.core_type<tc>} {
    %c0 = arith.constant 0 : index
    %c0_0 = arith.constant 0 : index
    %0 = vector.load %arg0[%c0, %c0_0] : memref<8x128xf32, #tpu.memory_space<vmem>>, vector<8x128xf32>
    %c3_i32 = arith.constant 3 : i32
    %1 = tpu.dynamic_rotate %0 by %c3_i32 dim 1 : vector<8x128xf32>, i32 -> vector<8x128xf32>
    %c0_1 = arith.constant 0 : index
    %c0_2 = arith.constant 0 : index
    %2 = vector.load %arg1[%c0_1, %c0_2] : memref<8x128xf32, #tpu.memory_space<vmem>>, vector<8x128xf32>
    tpu.vector_store %arg1[%c0_1, %c0_2], %1 {strides = array<i32>} : memref<8x128xf32, #tpu.memory_space<vmem>>, vector<8x128xf32>,
    return
  }
}

</mosaic_0001>

<bundles_post_ra>
// kernel: tpu_custom_call.1
= control target key start
LH: loop header
LB: loop body
LE: loop exit
PB: predicated region body
PF: predicated region fallthrough
CT: control target
= control target key end

     0   :  { %6 = vsyncpa [#allocation3], 0  ;;  %s106_s0 = inlined_call_operand.hbm [shape: f32[8,128], index: 0, kind: input, shape index: {}]   ;;  %s107_s1 = inlined_call_operand.hbm [shape: f32[8,128], index: 1, kind: output, shape index: {}]  }
   0x1   :  { %7 = vsyncpa [#allocation4], 0  ;;  %s87_s6 = smov [#allocation2]  }
   0x2   :  { %s14_s7 = sshll.u32 %s87_s6, 4  ;;  %s15_s7 = int_to_ptr.vmem [resolvable:$true] %s14_s7 }
   0x3   :  { %s51_s8 = scalar_lea.vmem %s15_s7, 128  ;;  %p56_p1 = scmp.lt.s32.totalorder %s15_s7, %s15_s7 }
   0x4   :  { %p52_p0 = scmp.ne.s32.totalorder %s15_s7, %s51_s8  ;;  %p57_p2 = scmp.lt.s32.totalorder %s51_s8, %s51_s8 }
   0x6   :  { %p58_p3 = por %p57_p2, %p56_p1 }
   0x8   :  { %p59_p4 = pnand %p58_p3, %p52_p0 }
   0xa   :  { %62 = shalt.err (!%p59_p4)
}
   0xb   :  { %17 = dma.hbm_to_vmem [thread:$0]  %s106_s0, 128, %s15_s7, [#allocation3]  }
   0xc   :  { %83 = dma.done.wait [#allocation3], 128  }
   0xd   :  { %84 = vsyncadd [#allocation3], 4294967168  ;;  %v21_v0 = vld [vmem:[#allocation2] sm:$0xff]  ;;  %s88_s11 = smov 3   ;;  %s89_s12 = smov [#allocation5]  }
   0xe   :  { %22 = vrot.lane.b32.xlu0 %v21_v0, %s88_s11  ;;  %s31_s13 = sshll.u32 %s89_s12, 4  ;;  %s32_s13 = int_to_ptr.vmem [resolvable:$true] %s31_s13 }
   0xf   :  { %s63_s14 = scalar_lea.vmem %s32_s13, 128  ;;  %p68_p6 = scmp.lt.s32.totalorder %s32_s13, %s32_s13 }
  0x10   :  { %p64_p5 = scmp.ne.s32.totalorder %s32_s13, %s63_s14  ;;  %p69_p7 = scmp.lt.s32.totalorder %s63_s14, %s63_s14 }
  0x12   :  { %p70_p8 = por %p69_p7, %p68_p6 }
  0x14   :  { %p71_p9 = pnand %p70_p8, %p64_p5 }
  0x80   :  { %v23_v1 = vpop.permute.xlu0 %22 }
  0x81   :  { %24 = vst [vmem:[#allocation5] sm:$0xff] %v23_v1 }
  0x82   :  { %74 = shalt.err (!%p71_p9)
}
  0x83   :  { %34 = dma.vmem_to_hbm [thread:$0]  %s32_s13, 128, %s107_s1, [#allocation4]  }
  0x84   :  { %85 = dma.done.wait [#allocation4], 128  }
  0x85   :  { %86 = vsyncadd [#allocation4], 4294967168 }
  0x86   :  { %38 = vsyncpa [#allocation3], 1 }
  0x87   :  { %39 = vsyncpa [#allocation4], 1 }

</bundles_post_ra>
